<compile_context>
chip_gen: v5e
topology: v5e:2x2
jax: 0.10.0
libtpu: 0.0.40
codegen_flags: <defaults>
</compile_context>

<pallas_src>
import numpy as np
import jax
import jax.numpy as jnp
from jax import lax
from jax.experimental import pallas as pl
from jax.experimental.pallas import tpu as pltpu


# ----------------------------------------------------------------------------
# Pallas kernel: attention-weighting + fused hidden2tag emission scores
# ----------------------------------------------------------------------------
def ner_attn_kernel(out_ref, mask_ref, trig_ref,
                    w1_ref, bc_ref, w2_ref, wa1_ref, ba1_ref,
                    wf_ref, bht_ref, scores_ref):
    out_bf = out_ref[...]                       # (bb, Tp, H)  bf16
    mask = mask_ref[...]                        # (bb, Tp, 1)  f32
    trig = trig_ref[...]                        # (bb, Hh)     bf16 (mid dim squeezed)

    bb, Tp, H = out_bf.shape
    Hh = w1_ref.shape[1]
    Lp2 = wf_ref.shape[1]
    Lp = Lp2 // 2

    # Merge (bb, Tp) -> rows.  Copy-free: Tp is padded to a multiple of 16
    # (bf16 sublane pack), so this is a re-tiling, not a VMEM relayout.
    out2 = out_bf.reshape(bb * Tp, H)

    # tanh(w1(output) + w2(trig_rep) + (b1 + b2)); trig term broadcast over T.
    # NOTE: at production sizes K=H and N=Hh should be >=128 for good MXU use;
    # if Hh stays tiny this projection could move to VPU mul+reduce instead.
    p1 = jnp.dot(out2, w1_ref[...], preferred_element_type=jnp.float32)
    p1 = p1.reshape(bb, Tp, Hh)                                       # free (Tp%8==0)
    p2 = jnp.dot(trig, w2_ref[...], preferred_element_type=jnp.float32)
    trig_applied = jnp.tanh(p1 + p2[:, None, :] + bc_ref[...])        # (bb,Tp,Hh)

    # attn1(.) as VPU mul + lane reduce (N=1 matmul not worth the MXU).
    # keepdims keeps T on the sublane axis -> no relayout for the softmax or
    # for the later (bb,Tp,1)*(bb,Tp,Lp) broadcast.
    x = jnp.sum(trig_applied * wa1_ref[...], axis=-1, keepdims=True) + ba1_ref[0, 0]
    # Mirrors torch: x = x * mask ; x[x == 0] = -inf.
    x = x * mask
    x = jnp.where(x == 0.0, -jnp.inf, x)

    # softmax over the sequence axis (torch dim=1); EUP exp + approx EUP vrcp.
    m = jnp.max(x, axis=1, keepdims=True)
    e = jnp.exp(x - m)
    w = e * pl.reciprocal(jnp.sum(e, axis=1, keepdims=True), approx=True)  # (bb,Tp,1)

    # Fused hidden2tag: concat([out, w*out]) @ Wht == out@Wa + w*(out@Wb),
    # ONE matmul against Wfused = [Wa | Wb] (lane-dense, 2*Lp columns).
    part = jnp.dot(out2, wf_ref[...], preferred_element_type=jnp.float32)
    part = part.reshape(bb, Tp, Lp2)                                   # free (Tp%8==0)
    scores = part[:, :, :Lp] + w * part[:, :, Lp:] + bht_ref[...]
    scores_ref[...] = scores.astype(scores_ref.dtype)                  # bf16 store


# ----------------------------------------------------------------------------
# Generation-aware tiling helpers
# ----------------------------------------------------------------------------
def _tpu_vmem_capacity_bytes():
    try:
        return int(pltpu.get_tpu_info().vmem_capacity_bytes)
    except Exception:
        return 64 << 20          # conservative default (v7x per-TC VMEM)


def _choose_batch_tile(B, Tp, H, Hh, Lp, budget_bytes, bufs):
    """Largest batch tile that (a) keeps >=2 grid programs when B >= 2 (so
    ("parallel",) spans both v7x TensorCores) and (b) keeps the buffered block
    footprint under budget_bytes.  bb need not divide B (B is padded)."""
    def blk_bytes(bb):
        io = bb * Tp * H * 2 + bb * Tp * 4 + bb * Hh * 2 + bb * Tp * Lp * 2
        interm = bb * Tp * (Hh + 3 * Lp) * 4
        return bufs * io + interm
    bb = max(1, pl.cdiv(B, 2))          # cap at ceil(B/2): >=2 programs when B>=2
    while bb > 1 and blk_bytes(bb) > budget_bytes:
        bb -= 1
    return bb


# ----------------------------------------------------------------------------
# Wrapper
# ----------------------------------------------------------------------------
def ner_attention_scores(output, sentence_mask, trig_rep, params):
    """output: (B,T,H) f32, sentence_mask: (B,T) f32, trig_rep: (B,Hh) f32."""
    B, T, H = output.shape
    Hh = params["w1"].shape[1]
    L = params["b_ht"].shape[-1]
    Lp = ((L + 127) // 128) * 128        # lane-dense output width
    Tp = ((T + 15) // 16) * 16           # bf16 sublane pack -> free in-kernel reshapes

    vmem_cap = _tpu_vmem_capacity_bytes()
    big_vmem = vmem_cap >= (100 << 20)   # v5e/v6e: 128 MiB ; v7x: 64 MiB per TC
    budget = (24 << 20) if big_vmem else (10 << 20)
    bufs = 3 if big_vmem else 2          # deeper activation buffering where VMEM allows

    bb = _choose_batch_tile(B, Tp, H, Hh, Lp, budget, bufs)
    grid_n = pl.cdiv(B, bb)
    Bp = grid_n * bb
    pad_b, pad_t = Bp - B, Tp - T

    # bf16 MXU feeds (f32 accumulation inside the kernel); pad batch + time.
    # Padded time steps have mask==0 -> -inf logits -> zero attention weight;
    # padded batch rows are sliced away below before the CRF.
    out_bf = jnp.pad(output.astype(jnp.bfloat16), ((0, pad_b), (0, pad_t), (0, 0)))
    mask3 = jnp.pad(sentence_mask.astype(jnp.float32),
                    ((0, pad_b), (0, pad_t)))[:, :, None]              # (Bp,Tp,1)
    trig3 = jnp.pad(trig_rep.astype(jnp.bfloat16), ((0, pad_b), (0, 0)))[:, None, :]

    w1_bf = params["w1"].astype(jnp.bfloat16)
    w2_bf = params["w2"].astype(jnp.bfloat16)
    bc = (params["b1"] + params["b2"]).astype(jnp.float32)             # (1, Hh)
    wa1_r = params["wa1"][:, 0].reshape(1, 1, Hh).astype(jnp.float32)
    ba1 = params["ba1"].astype(jnp.float32).reshape(1, 1)              # SMEM scalar

    # Fused + zero-padded hidden2tag weight: (H, 2*Lp) = [W[:H] | W[H:]].
    wht = params["w_ht"]
    wa = jnp.pad(wht[:H, :], ((0, 0), (0, Lp - L)))
    wb = jnp.pad(wht[H:, :], ((0, 0), (0, Lp - L)))
    wf_bf = jnp.concatenate([wa, wb], axis=1).astype(jnp.bfloat16)     # (H, 2Lp)
    bht_p = jnp.pad(params["b_ht"], ((0, 0), (0, Lp - L))).astype(jnp.float32)

    # VMEM accounting consistent with the chosen bb / buffer depths.
    blk_io = bb * Tp * H * 2 + bb * Tp * 4 + bb * Hh * 2 + bb * Tp * Lp * 2
    interm = bb * Tp * (Hh + 3 * Lp) * 4
    wts = (H * Hh + Hh * Hh + H * 2 * Lp) * 2 + (2 * Hh + Lp) * 4      # single-buffered
    need = bufs * blk_io + interm + wts
    cap = (96 << 20) if big_vmem else (48 << 20)   # headroom below physical VMEM
    vmem_limit = int(min(cap, max(16 << 20, 2 * need)))

    act_mode = pl.Buffered(3) if big_vmem else None    # default (2) on v7x
    res_mode = pl.Buffered(1)                          # resident weights: 1 buffer

    cost = pl.CostEstimate(
        flops=int(2 * Bp * Tp * H * (Hh + 2 * Lp) + 2 * Bp * Hh * Hh
                  + 10 * Bp * Tp * Hh + 4 * Bp * Tp * Lp),
        transcendentals=int(Bp * Tp * (Hh + 1)),
        bytes_accessed=int(Bp * Tp * H * 2 + Bp * Tp * 4 + Bp * Hh * 2
                           + Bp * Tp * Lp * 2 + wts),
    )

    scores_p = pl.pallas_call(
        ner_attn_kernel,
        out_shape=jax.ShapeDtypeStruct((Bp, Tp, Lp), jnp.bfloat16),
        grid=(grid_n,),
        in_specs=[
            pl.BlockSpec((bb, Tp, H), lambda i: (i, 0, 0),
                         pipeline_mode=act_mode),                      # output  (bf16)
            pl.BlockSpec((bb, Tp, 1), lambda i: (i, 0, 0),
                         pipeline_mode=act_mode),                      # mask    (f32)
            pl.BlockSpec((bb, pl.Squeezed(), Hh), lambda i: (i, 0, 0),
                         pipeline_mode=act_mode),                      # trig    (bf16)
            pl.BlockSpec((H, Hh), lambda i: (0, 0), pipeline_mode=res_mode),      # w1
            pl.BlockSpec((1, Hh), lambda i: (0, 0), pipeline_mode=res_mode),      # b1+b2
            pl.BlockSpec((Hh, Hh), lambda i: (0, 0), pipeline_mode=res_mode),     # w2
            pl.BlockSpec((1, 1, Hh), lambda i: (0, 0, 0),
                         pipeline_mode=res_mode),                      # attn1 weight
            pl.BlockSpec(memory_space=pltpu.MemorySpace.SMEM),         # attn1 bias (scalar)
            pl.BlockSpec((H, 2 * Lp), lambda i: (0, 0), pipeline_mode=res_mode),  # Wfused
            pl.BlockSpec((1, Lp), lambda i: (0, 0), pipeline_mode=res_mode),      # bht
        ],
        out_specs=pl.BlockSpec((bb, Tp, Lp), lambda i: (i, 0, 0)),
        compiler_params=pltpu.CompilerParams(
            dimension_semantics=("parallel",),
            vmem_limit_bytes=vmem_limit),
        cost_estimate=cost,
    )(out_bf, mask3, trig3,
      w1_bf, bc, w2_bf, wa1_r, ba1, wf_bf, bht_p)

    # Un-pad (batch, time, tag) and return f32 emissions for the CRF.
    return scores_p[:B, :T, :L].astype(jnp.float32)


# ----------------------------------------------------------------------------
# Pure-f32 JAX reference of the same hot path (for a sanity check only)
# ----------------------------------------------------------------------------
def ner_attention_scores_ref(output, sentence_mask, trig_rep, p):
    p1 = jnp.einsum("bth,hk->btk", output, p["w1"]) + p["b1"]
    p2 = trig_rep @ p["w2"] + p["b2"]
    ta = jnp.tanh(p1 + p2[:, None, :])
    x = jnp.einsum("btk,ko->bto", ta, p["wa1"])[..., 0] + p["ba1"][0, 0]
    x = x * sentence_mask
    x = jnp.where(x == 0.0, -jnp.inf, x)
    w = jax.nn.softmax(x, axis=1)
    attn = w[:, :, None] * output
    cat = jnp.concatenate([output, attn], axis=-1)
    return jnp.einsum("btd,dl->btl", cat, p["w_ht"]) + p["b_ht"]


# ----------------------------------------------------------------------------
# Plain-JAX glue: standard masked linear-chain CRF loss
# (LinearCRF internals are not given in the provided module source.)
# ----------------------------------------------------------------------------
def crf_loss(emissions, tags, mask, transitions, start_trans, end_trans):
    B, T, L = emissions.shape
    em_t = jnp.transpose(emissions, (1, 0, 2))        # (T, B, L)
    tags_t = tags.T                                   # (T, B)
    mask_f = mask.astype(jnp.float32)
    mask_t = mask_f.T                                 # (T, B)
    barange = jnp.arange(B)

    # labeled (gold) score
    gold0 = start_trans[tags_t[0]] + em_t[0, barange, tags_t[0]]

    def gold_step(score, xs):
        emit, tg, tg_prev, m = xs
        step = transitions[tg_prev, tg] + emit[barange, tg]
        return score + step * m, None

    gold, _ = lax.scan(gold_step, gold0,
                       (em_t[1:], tags_t[1:], tags_t[:-1], mask_t[1:]))
    last_idx = jnp.sum(mask.astype(jnp.int32), axis=1) - 1
    last_tag = tags[barange, last_idx]
    gold = gold + end_trans[last_tag]

    # unlabeled (partition) score
    alpha0 = start_trans[None, :] + em_t[0]

    def fwd_step(alpha, xs):
        emit, m = xs
        scores = alpha[:, :, None] + transitions[None, :, :] + emit[:, None, :]
        new_alpha = jax.scipy.special.logsumexp(scores, axis=1)
        alpha = jnp.where(m[:, None] > 0, new_alpha, alpha)
        return alpha, None

    alpha, _ = lax.scan(fwd_step, alpha0, (em_t[1:], mask_t[1:]))
    logZ = jax.scipy.special.logsumexp(alpha + end_trans[None, :], axis=1)
    return jnp.sum(logZ - gold)    # unlabeled_score - labeled_score


# ----------------------------------------------------------------------------
# Parameter / input construction and end-to-end forward
# ----------------------------------------------------------------------------
def make_params(key, H, Hh, L):
    ks = jax.random.split(key, 16)

    def lin(k, fin, fout):
        bound = 1.0 / np.sqrt(fin)
        kw, kb = jax.random.split(k)
        w = jax.random.uniform(kw, (fin, fout), jnp.float32, -bound, bound)
        b = jax.random.uniform(kb, (1, fout), jnp.float32, -bound, bound)
        return w, b

    w1, b1 = lin(ks[0], H, Hh)           # self.w1
    w2, b2 = lin(ks[1], Hh, Hh)          # self.w2
    wa1, ba1 = lin(ks[2], Hh, 1)         # self.attn1
    w_ht, b_ht = lin(ks[3], 2 * H, L)    # self.hidden2tag
    transitions = 0.1 * jax.random.normal(ks[4], (L, L), jnp.float32)
    start_trans = 0.1 * jax.random.normal(ks[5], (L,), jnp.float32)
    end_trans = 0.1 * jax.random.normal(ks[6], (L,), jnp.float32)
    return dict(w1=w1, b1=b1, w2=w2, b2=b2, wa1=wa1, ba1=ba1,
                w_ht=w_ht, b_ht=b_ht,
                transitions=transitions, start_trans=start_trans,
                end_trans=end_trans)


def ner_encoder_forward(word_seq_tensor, word_seq_lens, tags, params,
                        embedding, trig_rep):
    """Mirrors NEREncoder.forward: returns sequence_loss."""
    B, T = word_seq_tensor.shape
    # TODO(synk): Encoder / match_encoder / match_attention sources not given;
    # stand-in encoder = deterministic embedding lookup, trig_rep supplied.
    sentence_mask = (jnp.arange(1, T + 1)[None, :] <= word_seq_lens[:, None])
    sentence_mask_f = sentence_mask.astype(jnp.float32)
    output = embedding[word_seq_tensor] * sentence_mask_f[:, :, None]   # (B,T,H)

    # --- Pallas hot path: attention weighting + hidden2tag ------------------
    lstm_scores = ner_attention_scores(output, sentence_mask_f, trig_rep, params)

    # --- CRF loss (plain JAX glue) ------------------------------------------
    loss = crf_loss(lstm_scores, tags, sentence_mask,
                    params["transitions"], params["start_trans"],
                    params["end_trans"])
    return loss


if __name__ == "__main__":
    B, T, H, Hh, L, VOCAB = 2, 8, 32, 16, 5, 50

    key = jax.random.PRNGKey(0)
    k_emb, k_words, k_tags, k_trig, k_par = jax.random.split(key, 5)

    word_seq_tensor = jax.random.randint(k_words, (B, T), 0, VOCAB, dtype=jnp.int32)
    word_seq_lens = jnp.array([T, 5], dtype=jnp.int32)
    tags = jax.random.randint(k_tags, (B, T), 0, L, dtype=jnp.int32)

    embedding = jax.random.normal(k_emb, (VOCAB, H), jnp.float32)
    trig_rep = jax.random.normal(k_trig, (B, Hh), jnp.float32)  # match_attention output (detached)

    params = make_params(k_par, H, Hh, L)

    # --- kernel correctness check vs. pure-f32 reference ---------------------
    # Tolerance accounts for bf16 activation/weight feeds, bf16 output store
    # and the approximate EUP reciprocal in the softmax denominator.
    sentence_mask_f = (jnp.arange(1, T + 1)[None, :]
                       <= word_seq_lens[:, None]).astype(jnp.float32)
    output = embedding[word_seq_tensor] * sentence_mask_f[:, :, None]
    got = jax.block_until_ready(
        ner_attention_scores(output, sentence_mask_f, trig_rep, params))
    ref = ner_attention_scores_ref(output, sentence_mask_f, trig_rep, params)
    np.testing.assert_allclose(np.asarray(got), np.asarray(ref),
                               rtol=5e-2, atol=5e-2)

    # --- end-to-end forward jitted as one program ----------------------------
    loss = jax.jit(ner_encoder_forward)(word_seq_tensor, word_seq_lens, tags,
                                        params, embedding, trig_rep)
    loss = jax.block_until_ready(loss)
    assert np.isfinite(float(loss))
    print("KERNEL_OK")
</pallas_src>

<mosaic_0001>
module attributes {stable_mosaic.version = 11 : i64} {
  func.func @ner_attn_kernel(%arg0: i32, %arg1: memref<1x16x32xbf16, #tpu.memory_space<vmem>>, %arg2: memref<1x16x1xf32, #tpu.memory_space<vmem>>, %arg3: memref<1x1x16xbf16, #tpu.memory_space<vmem>>, %arg4: memref<32x16xbf16, #tpu.memory_space<vmem>>, %arg5: memref<1x16xf32, #tpu.memory_space<vmem>>, %arg6: memref<16x16xbf16, #tpu.memory_space<vmem>>, %arg7: memref<1x1x16xf32, #tpu.memory_space<vmem>>, %arg8: memref<1x1xf32, #tpu.memory_space<smem>>, %arg9: memref<32x256xbf16, #tpu.memory_space<vmem>>, %arg10: memref<1x128xf32, #tpu.memory_space<vmem>>, %arg11: memref<1x16x128xbf16, #tpu.memory_space<vmem>>) attributes {dimension_semantics = [#tpu.dimension_semantics<parallel>], iteration_bounds = array<i64: 2>, scalar_prefetch = 0 : i64, scratch_operands = 0 : i64, tpu.core_type = #tpu.core_type<tc>, window_params = [{transform_indices = @transform_0, window_bounds = array<i64: 1, 16, 32>}, {transform_indices = @transform_1, window_bounds = array<i64: 1, 16, 1>}, {transform_indices = @transform_2, window_bounds = array<i64: 1, 1, 16>}, {pipeline_mode = #tpu.pipeline_mode<synchronous>, transform_indices = @transform_3, window_bounds = array<i64: 32, 16>}, {pipeline_mode = #tpu.pipeline_mode<synchronous>, transform_indices = @transform_4, window_bounds = array<i64: 1, 16>}, {pipeline_mode = #tpu.pipeline_mode<synchronous>, transform_indices = @transform_5, window_bounds = array<i64: 16, 16>}, {pipeline_mode = #tpu.pipeline_mode<synchronous>, transform_indices = @transform_6, window_bounds = array<i64: 1, 1, 16>}, {transform_indices = @transform_7, window_bounds = array<i64: 1, 1>}, {pipeline_mode = #tpu.pipeline_mode<synchronous>, transform_indices = @transform_8, window_bounds = array<i64: 32, 256>}, {pipeline_mode = #tpu.pipeline_mode<synchronous>, transform_indices = @transform_9, window_bounds = array<i64: 1, 128>}, {transform_indices = @transform_10, window_bounds = array<i64: 1, 16, 128>}]} {
    %c0 = arith.constant 0 : index
    %c0_0 = arith.constant 0 : index
    %c0_1 = arith.constant 0 : index
    %0 = vector.load %arg1[%c0, %c0_0, %c0_1] : memref<1x16x32xbf16, #tpu.memory_space<vmem>>, vector<1x16x32xbf16>
    %c0_2 = arith.constant 0 : index
    %c0_3 = arith.constant 0 : index
    %c0_4 = arith.constant 0 : index
    %1 = vector.load %arg2[%c0_2, %c0_3, %c0_4] : memref<1x16x1xf32, #tpu.memory_space<vmem>>, vector<1x16x1xf32>
    %c0_5 = arith.constant 0 : index
    %c0_6 = arith.constant 0 : index
    %c0_7 = arith.constant 0 : index
    %2 = vector.load %arg3[%c0_5, %c0_6, %c0_7] : memref<1x1x16xbf16, #tpu.memory_space<vmem>>, vector<1x1x16xbf16>
    %3 = vector.shape_cast %2 : vector<1x1x16xbf16> to vector<1x16xbf16>
    %4 = vector.shape_cast %0 : vector<1x16x32xbf16> to vector<16x32xbf16>
    %c0_8 = arith.constant 0 : index
    %c0_9 = arith.constant 0 : index
    %5 = vector.load %arg4[%c0_8, %c0_9] : memref<32x16xbf16, #tpu.memory_space<vmem>>, vector<32x16xbf16>
    %cst = arith.constant dense<0.000000e+00> : vector<16x16xf32>
    %6 = tpu.matmul %4, %5, %cst {dimension_numbers = #tpu.dot_dimension_numbers<[1], [0], [0], [1], [0, 0, 1, 1], [], []>} : vector<16x32xbf16>, vector<32x16xbf16>, vector<16x16xf32> -> vector<16x16xf32>
    %7 = vector.shape_cast %6 : vector<16x16xf32> to vector<1x16x16xf32>
    %c0_10 = arith.constant 0 : index
    %c0_11 = arith.constant 0 : index
    %8 = vector.load %arg6[%c0_10, %c0_11] : memref<16x16xbf16, #tpu.memory_space<vmem>>, vector<16x16xbf16>
    %cst_12 = arith.constant dense<0.000000e+00> : vector<1x16xf32>
    %9 = tpu.matmul %3, %8, %cst_12 {dimension_numbers = #tpu.dot_dimension_numbers<[1], [0], [0], [1], [0, 0, 1, 1], [], []>} : vector<1x16xbf16>, vector<16x16xbf16>, vector<1x16xf32> -> vector<1x16xf32>
    %10 = vector.shape_cast %9 : vector<1x16xf32> to vector<1x1x16xf32>
    %11 = vector.broadcast %10 : vector<1x1x16xf32> to vector<1x16x16xf32>
    %12 = arith.addf %7, %11 : vector<1x16x16xf32>
    %c0_13 = arith.constant 0 : index
    %c0_14 = arith.constant 0 : index
    %13 = vector.load %arg5[%c0_13, %c0_14] : memref<1x16xf32, #tpu.memory_space<vmem>>, vector<1x16xf32>
    %14 = vector.shape_cast %13 : vector<1x16xf32> to vector<1x1x16xf32>
    %15 = vector.broadcast %14 : vector<1x1x16xf32> to vector<1x16x16xf32>
    %16 = arith.addf %12, %15 : vector<1x16x16xf32>
    %17 = math.tanh %16 : vector<1x16x16xf32>
    %c0_15 = arith.constant 0 : index
    %c0_16 = arith.constant 0 : index
    %c0_17 = arith.constant 0 : index
    %18 = vector.load %arg7[%c0_15, %c0_16, %c0_17] : memref<1x1x16xf32, #tpu.memory_space<vmem>>, vector<1x1x16xf32>
    %19 = vector.broadcast %18 : vector<1x1x16xf32> to vector<1x16x16xf32>
    %20 = arith.mulf %17, %19 : vector<1x16x16xf32>
    %cst_18 = arith.constant dense<0.000000e+00> : vector<1x16xf32>
    %21 = vector.multi_reduction <add>, %20, %cst_18 [2] : vector<1x16x16xf32> to vector<1x16xf32>
    %22 = vector.shape_cast %21 : vector<1x16xf32> to vector<1x16x1xf32>
    %c0_19 = arith.constant 0 : index
    %c0_20 = arith.constant 0 : index
    %23 = memref.load %arg8[%c0_19, %c0_20] : memref<1x1xf32, #tpu.memory_space<smem>>
    %24 = vector.broadcast %23 : f32 to vector<1x16x1xf32>
    %25 = arith.addf %22, %24 : vector<1x16x1xf32>
    %26 = arith.mulf %25, %1 : vector<1x16x1xf32>
    %cst_21 = arith.constant 0.000000e+00 : f32
    %27 = vector.broadcast %cst_21 : f32 to vector<1x16x1xf32>
    %28 = arith.cmpf oeq, %26, %27 : vector<1x16x1xf32>
    %cst_22 = arith.constant 0xFF800000 : f32
    %29 = vector.broadcast %cst_22 : f32 to vector<1x16x1xf32>
    %30 = arith.select %28, %29, %26 : vector<1x16x1xi1>, vector<1x16x1xf32>
    %cst_23 = arith.constant dense<0xFF800000> : vector<1x1xf32>
    %31 = vector.multi_reduction <maximumf>, %30, %cst_23 [1] : vector<1x16x1xf32> to vector<1x1xf32>
    %32 = vector.shape_cast %31 : vector<1x1xf32> to vector<1x1x1xf32>
    %33 = vector.broadcast %32 : vector<1x1x1xf32> to vector<1x16x1xf32>
    %34 = arith.subf %30, %33 : vector<1x16x1xf32>
    %35 = math.exp %34 : vector<1x16x1xf32>
    %cst_24 = arith.constant dense<0.000000e+00> : vector<1x1xf32>
    %36 = vector.multi_reduction <add>, %35, %cst_24 [1] : vector<1x16x1xf32> to vector<1x1xf32>
    %37 = vector.shape_cast %36 : vector<1x1xf32> to vector<1x1x1xf32>
    %38 = tpu.reciprocal %37 {approx = true} : vector<1x1x1xf32> -> vector<1x1x1xf32>
    %39 = vector.broadcast %38 : vector<1x1x1xf32> to vector<1x16x1xf32>
    %40 = arith.mulf %35, %39 : vector<1x16x1xf32>
    %c0_25 = arith.constant 0 : index
    %c0_26 = arith.constant 0 : index
    %41 = vector.load %arg9[%c0_25, %c0_26] : memref<32x256xbf16, #tpu.memory_space<vmem>>, vector<32x256xbf16>
    %cst_27 = arith.constant dense<0.000000e+00> : vector<16x256xf32>
    %42 = tpu.matmul %4, %41, %cst_27 {dimension_numbers = #tpu.dot_dimension_numbers<[1], [0], [0], [1], [0, 0, 1, 1], [], []>} : vector<16x32xbf16>, vector<32x256xbf16>, vector<16x256xf32> -> vector<16x256xf32>
    %43 = vector.shape_cast %42 : vector<16x256xf32> to vector<1x16x256xf32>
    %44 = vector.extract_strided_slice %43 {offsets = [0, 0, 0], sizes = [1, 16, 128], strides = [1, 1, 1]} : vector<1x16x256xf32> to vector<1x16x128xf32>
    %45 = vector.extract_strided_slice %43 {offsets = [0, 0, 128], sizes = [1, 16, 128], strides = [1, 1, 1]} : vector<1x16x256xf32> to vector<1x16x128xf32>
    %46 = vector.broadcast %40 : vector<1x16x1xf32> to vector<1x16x128xf32>
    %47 = arith.mulf %46, %45 : vector<1x16x128xf32>
    %48 = arith.addf %44, %47 : vector<1x16x128xf32>
    %c0_28 = arith.constant 0 : index
    %c0_29 = arith.constant 0 : index
    %49 = vector.load %arg10[%c0_28, %c0_29] : memref<1x128xf32, #tpu.memory_space<vmem>>, vector<1x128xf32>
    %50 = vector.shape_cast %49 : vector<1x128xf32> to vector<1x1x128xf32>
    %51 = vector.broadcast %50 : vector<1x1x128xf32> to vector<1x16x128xf32>
    %52 = arith.addf %48, %51 : vector<1x16x128xf32>
    %53 = arith.truncf %52 : vector<1x16x128xf32> to vector<1x16x128xbf16>
    %c0_30 = arith.constant 0 : index
    %c0_31 = arith.constant 0 : index
    %c0_32 = arith.constant 0 : index
    %54 = vector.load %arg11[%c0_30, %c0_31, %c0_32] : memref<1x16x128xbf16, #tpu.memory_space<vmem>>, vector<1x16x128xbf16>
    tpu.vector_store %arg11[%c0_30, %c0_31, %c0_32], %53 {strides = array<i32>} : memref<1x16x128xbf16, #tpu.memory_space<vmem>>, vector<1x16x128xbf16>,
    return
  }
  func.func @transform_0(%arg0: i32) -> (i32, i32, i32) {
    %c0_i32 = arith.constant 0 : i32
    %c0_i32_0 = arith.constant 0 : i32
    %c0_i32_1 = arith.constant 0 : i32
    return %arg0, %c0_i32, %c0_i32_0 : i32, i32, i32
  }
  func.func @transform_1(%arg0: i32) -> (i32, i32, i32) {
    %c0_i32 = arith.constant 0 : i32
    %c0_i32_0 = arith.constant 0 : i32
    %c0_i32_1 = arith.constant 0 : i32
    return %arg0, %c0_i32, %c0_i32_0 : i32, i32, i32
  }
  func.func @transform_2(%arg0: i32) -> (i32, i32, i32) {
    %c0_i32 = arith.constant 0 : i32
    %c0_i32_0 = arith.constant 0 : i32
    %c0_i32_1 = arith.constant 0 : i32
    return %arg0, %c0_i32, %c0_i32_0 : i32, i32, i32
  }
  func.func @transform_3(%arg0: i32) -> (i32, i32) {
    %c0_i32 = arith.constant 0 : i32
    %c0_i32_0 = arith.constant 0 : i32
    %c0_i32_1 = arith.constant 0 : i32
    return %c0_i32, %c0_i32_0 : i32, i32
  }
  func.func @transform_4(%arg0: i32) -> (i32, i32) {
    %c0_i32 = arith.constant 0 : i32
    %c0_i32_0 = arith.constant 0 : i32
    %c0_i32_1 = arith.constant 0 : i32
    return %c0_i32, %c0_i32_0 : i32, i32
  }
  func.func @transform_5(%arg0: i32) -> (i32, i32) {
    %c0_i32 = arith.constant 0 : i32
    %c0_i32_0 = arith.constant 0 : i32
    %c0_i32_1 = arith.constant 0 : i32
    return %c0_i32, %c0_i32_0 : i32, i32
  }
  func.func @transform_6(%arg0: i32) -> (i32, i32, i32) {
    %c0_i32 = arith.constant 0 : i32
    %c0_i32_0 = arith.constant 0 : i32
    %c0_i32_1 = arith.constant 0 : i32
    %c0_i32_2 = arith.constant 0 : i32
    return %c0_i32, %c0_i32_0, %c0_i32_1 : i32, i32, i32
  }
  func.func @transform_7(%arg0: i32) -> (i32, i32) {
    %c0_i32 = arith.constant 0 : i32
    %c0_i32_0 = arith.constant 0 : i32
    %c0_i32_1 = arith.constant 0 : i32
    return %c0_i32, %c0_i32_0 : i32, i32
  }
  func.func @transform_8(%arg0: i32) -> (i32, i32) {
    %c0_i32 = arith.constant 0 : i32
    %c0_i32_0 = arith.constant 0 : i32
    %c0_i32_1 = arith.constant 0 : i32
    return %c0_i32, %c0_i32_0 : i32, i32
  }
  func.func @transform_9(%arg0: i32) -> (i32, i32) {
    %c0_i32 = arith.constant 0 : i32
    %c0_i32_0 = arith.constant 0 : i32
    %c0_i32_1 = arith.constant 0 : i32
    return %c0_i32, %c0_i32_0 : i32, i32
  }
  func.func @transform_10(%arg0: i32) -> (i32, i32, i32) {
    %c0_i32 = arith.constant 0 : i32
    %c0_i32_0 = arith.constant 0 : i32
    %c0_i32_1 = arith.constant 0 : i32
    return %arg0, %c0_i32, %c0_i32_0 : i32, i32, i32
  }
}

</mosaic_0001>

<bundles_post_ra>
// kernel: tpu_custom_call.1
= control target key start
LH: loop header
LB: loop body
LE: loop exit
PB: predicated region body
PF: predicated region fallthrough
CT: control target
= control target key end

     0   :  { %s1095_s0 = inlined_call_operand.vmem [shape: bf16[2,16,32], index: 0, kind: input, shape index: {}]   ;;  %s1096_s1 = inlined_call_operand.vmem [shape: f32[2,16,1], index: 1, kind: input, shape index: {}]   ;;  %s1097_s2 = inlined_call_operand.vmem [shape: bf16[2,1,16], index: 2, kind: input, shape index: {}]   ;;  %s1098_s3 = inlined_call_operand.vmem [shape: bf16[32,16], index: 3, kind: input, shape index: {}]   ;;  %s1099_s4 = inlined_call_operand.vmem [shape: f32[1,16], index: 4, kind: input, shape index: {}]   ;;  %s1100_s5 = inlined_call_operand.vmem [shape: bf16[16,16], index: 5, kind: input, shape index: {}]   ;;  %s1101_s6 = inlined_call_operand.vmem [shape: f32[1,1,16], index: 6, kind: input, shape index: {}]   ;;  %s1102_s7 = inlined_call_operand.<no memory space> [shape: f32[1,1], index: 7, kind: input, shape index: {}]   ;;  %s1103_s8 = inlined_call_operand.vmem [shape: bf16[32,256], index: 8, kind: input, shape index: {}]   ;;  %s1104_s9 = inlined_call_operand.vmem [shape: f32[1,128], index: 9, kind: input, shape index: {}]   ;;  %s1105_s10 = inlined_call_operand.hbm [shape: bf16[2,16,128], index: 10, kind: output, shape index: {}]  }
   0x1   :  { %15 = sst [smem:[#allocation2]] %s1102_s7 }
   0x2   :  { %16 = vsyncpa [#allocation4], 0 }
   0x3   :  { %18 = vsyncpa [#allocation4 + $0x1], 0  ;;  %s947_s15 = smov 0   ;;  %s949_s16 = smov 0  }
   0x4   :  { %s951_s17 = smov 0   ;;  %s953_s18 = smov 0  }
   0x5 LB: > { %s968_s7 = sadd.s32 4294967295, %s884_s18   ;;  %s699_s19 = sadd.s32 4294967294, %s884_s18   ;;  %s884_s18 = sphi %s953_s18, %s1111_s18   ;;  %s880_s17 = sphi %s951_s17, %s1110_s17   ;;  %s876_s16 = sphi %s949_s16, %s1109_s16   ;;  %s872_s15 = sphi %s947_s15, %s1108_s15  }
   0x6   : > { %s972_s20 = sadd.s32 1, %s884_s18   ;;  %s256_s21 = sadd.s32 1, %s880_s17 }
   0x7   : > { %s253_s22 = ssub.s32 %s884_s18, %s972_s20  ;;  %p266_p0 = scmp.ne.s32.totalorder %s880_s17, %s876_s16 }
   0x8   : > { %p254_p1 = scmp.eq.s32.totalorder %s253_s22, 0  ;;  %p267_p2 = scmp.eq.s32.totalorder %s968_s7, 1 }
   0x9   : > { %p272_p3 = scmp.ne.s32.totalorder %s876_s16, %s872_s15  ;;  %p273_p4 = scmp.eq.s32.totalorder %s699_s19, 1 }
   0xa   : > { %s983_s23 = scalar_select %p254_p1, %s880_s17, %s256_s21  }
   0xb   : > { %p985_p5 = por %p267_p2, %p266_p0  ;;  %p989_p6 = por %p273_p4, %p272_p3 }
   0xc   : > { %p702_p7 = scmp.ge.s32.totalorder %s884_s18, 1  ;;  %p334_p8 = scmp.lt.s32.totalorder %s884_s18, 3 }
   0xe   : > { %p335_p9 = pnand %p702_p7, %p334_p8 }
   0xf   : > { %p380_p10 = scmp.lt.s32.totalorder (!%p335_p9), %s968_s7, 1  ;;  %s486_s13 = sld [smem:[#allocation2]] (!%p335_p9) }
  0x10   : > { %338 = sbr.rel (%p335_p9) target bundleno = 485 (0x1e5), region = 60 }
  0x15   : > { %v753_v0 = vld [vmem:[%s1098_s3 + $0x8] sm:$0xff]  ;;  %v754_v1 = vld [vmem:[%s1100_s5] sm:$0xff]  ;;  %s1003_s30 = scalar_select %p380_p10, %s968_s7, 1  ;;  %vm446_vm0 = vcmask 130048   ;;  %vm420_vm1 = vcmask 261120   ;;  %v487_v22 = vstv %s486_s13  ;;  %v886_v42 = vmov 0  }
  0x16   : > { %430 = vmatpush.bf16.msra.mxu0 %v753_v0  ;;  %457 = vmatpush.bf16.msra.mxu1 %v754_v1  ;;  %v752_v2 = vld [vmem:[%s1098_s3] sm:$0xff]  ;;  %v757_v23 = vld [vmem:[%s1103_s8 + $0x14] sm:$0xf]  ;;  %v738_v24 = vld [vmem:[%s1103_s8 + $0x18] sm:$0xf0]  ;;  %vm496_vm3 = vcmask 7168  }
  0x17   : > { %s392_s19 = scalar_lea.vmem %s1097_s2, %s1003_s30  ;;  %s749_s21 = sshll.u32 %s1003_s30, 3  ;;  %v809_v7 = vld [vmem:[%s1099_s4] ss:$0 sm:$0xff]  ;;  %v741_v25 = vor.u32 %v757_v23, %v738_v24  ;;  %v736_v27 = vld [vmem:[%s1103_s8 + $0x10] sm:$0xf]  ;;  %807 = vset.pattern.permute.xlu1 %v886_v42  ;;  %808 = vset.pattern.permute.xlu0 %v886_v42 }
  0x18   : > { %v398_v3 = vld [vmem:[%s392_s19] sm:$0x1]  ;;  %s384_s27 = scalar_lea.vmem %s1095_s0, %s749_s21  ;;  %s750_s14 = sshll.u32 %s1003_s30, 4  ;;  %v758_v28 = vld [vmem:[%s1103_s8 + $0x14] sm:$0xf0] }
  0x19   : > { %725 = vmatmul.msk.bf16.vlgmr.msra.gmra.mxu1 %vm446_vm0, %v398_v3  ;;  %v751_v4 = vld [vmem:[%s384_s27] sm:$0xff]  ;;  %s389_s29 = scalar_lea.vmem %s1096_s1, %s750_s14  ;;  %568 = vmatpush.bf16.msra.mxu3 %v741_v25  ;;  %v737_v30 = vor.u32 %v758_v28, %v736_v27  ;;  %v730_v33 = vld [vmem:[%s1103_s8 + $0x8] sm:$0xf0]  ;;  %v756_v36 = vld [vmem:[%s1103_s8 + $0x4] sm:$0xf0]  ;;  %s759_s30 = sshll.u32 %s968_s7, 3 }
  0x1a   : > { %431 = vmatpush.bf16.msra.mxu0 %v752_v2  ;;  %v810_v13 = vld [vmem:[%s1101_s6] ss:$0 sm:$0xff]  ;;  %v755_v32 = vld [vmem:[%s1103_s8 + $0x4] sm:$0xf]  ;;  %v397_v39 = vld [vmem:[%s389_s29 + $0x8] sm:$0xff]  ;;  %s612_s21 = scalar_lea.hbm %s1105_s10, %s759_s30 }
  0x1b   : > { %v396_v31 = vld [vmem:[%s389_s29] sm:$0xff]  ;;  %554 = vmatpush.bf16.msra.mxu2 %v737_v30  ;;  %v733_v34 = vor.u32 %v755_v32, %v730_v33  ;;  %s377_s29 = sand.u32 1, %s876_s16   ;;  %s615_s28 = sshll.u32 %s612_s21, 4  ;;  %s616_s28 = int_to_ptr.hbm [resolvable:$true] %s615_s28 }
  0x1c   : > { %v728_v35 = vld [vmem:[%s1103_s8] sm:$0xf]  ;;  %s703_s12 = sshll.u32 %s377_s29, 3  ;;  %s601_s7 = scalar_lea.sflag [#allocation4], %s377_s29 }
  0x1d   : > { %720 = vmatmul.msk.bf16.vlgmr.msra.gmra.mxu0 %vm420_vm1, %v751_v4  ;;  %569 = vmatpush.bf16.msra.mxu3 %v733_v34  ;;  %v729_v38 = vor.u32 %v756_v36, %v728_v35  ;;  %s379_s26 = scalar_lea.vmem [#allocation3], %s703_s12  ;;  %s836_s11 = sshra.s32 %s616_s28, 4  ;;  %s837_s11 = int_to_ptr.hbm [resolvable:$true] %s836_s11 }
  0x1e   : > { %s613_s27 = sshll.u32 %s379_s26, 4  ;;  %s838_s30 = scalar_lea.hbm %s837_s11, 8  ;;  %s614_s27 = int_to_ptr.vmem [resolvable:$true] %s613_s27 }
  0x1f   : > { %555 = vmatpush.bf16.msra.mxu2 %v729_v38  ;;  %p839_p11 = scmp.ne.s32.totalorder %s837_s11, %s838_s30  ;;  %s842_s12 = scalar_lea.hbm %s1105_s10, 16 }
  0x20   : > { %743 = vmatmul.msk.bf16.vlgmr.msra.gmra.mxu3 %vm420_vm1, %v751_v4  ;;  %p843_p0 = scmp.lt.s32.totalorder %s837_s11, %s1105_s10  ;;  %p844_p1 = scmp.lt.s32.totalorder %s842_s12, %s838_s30 }
  0x21   : > { %p840_p12 = pnand %p839_p11, %p985_p5 }
  0x22   : > { %742 = vmatmul.msk.bf16.vlgmr.msra.gmra.mxu2 %vm420_vm1, %v751_v4  ;;  %p845_p2 = por %p844_p1, %p843_p0 }
  0x23   : > { %p841_p13 = pneg %p840_p12 }
  0x25   : > { %p846_p3 = pnand %p845_p2, %p841_p13 }
  0x96   : > { %v459_v5 = vpop.f32.mrf.mxu1 }
  0x97   : > { %v463_v6 = vperm.slane %v459_v5, 0 }
  0x9a   : > { %v433_v8 = vpop.f32.mrf.mxu0 }
  0x9b   : > { %v464_v9 = vadd.f32 %v463_v6, %v433_v8 }
  0x9d   : > { %v470_v10 = vadd.f32 %v809_v7, %v464_v9 }
  0x9e   : > { %v461_v11 = vpop.f32.mrf.mxu1 }
  0x9f   : > { %812 = vtanh.f32 %v470_v10 }
  0xa2   : > { %v435_v12 = vpop.f32.mrf.mxu0 }
  0xa3   : > { %v465_v14 = vadd.f32 %v463_v6, %v435_v12  ;;  %v571_v9 = vpop.f32.mrf.mxu3 }
  0xa5   : > { %v813_v15 = vpop.eup %812  ;;  %v471_v16 = vadd.f32 %v809_v7, %v465_v14  ;;  %v557_v10 = vpop.f32.mrf.mxu2 }
  0xa6   : > { %v478_v17 = vmul.f32 %v813_v15, %v810_v13  ;;  %v811_v15 = vld [vmem:[%s1104_s9] ss:$0 sm:$0xff] }
  0xa7   : > { %814 = vtanh.f32 %v471_v16 }
  0xa8   : > { %v480_v18 = vsel %vm446_vm0, %v478_v17, 0.0 }
  0xa9   : > { %481 = vadd.xlane.f32.xlu0 %v480_v18 }
  0xad   : > { %v815_v19 = vpop.eup %814  ;;  %v559_v18 = vpop.f32.mrf.mxu2 }
  0xae   : > { %v479_v20 = vmul.f32 %v815_v19, %v810_v13  ;;  %v573_v13 = vpop.f32.mrf.mxu3 }
  0xb0   : > { %v483_v21 = vsel %vm446_vm0, %v479_v20, 0.0 }
  0xb1   : > { %484 = vadd.xlane.f32.xlu0 %v483_v21 }
 0x11c   : > { %v482_v26 = vpop.xlane.xlu0 %481 }
 0x11d   : > { %v488_v29 = vadd.f32 %v487_v22, %v482_v26 }
 0x11f   : > { %v490_v37 = vmul.f32 %v488_v29, %v396_v31 }
 0x121   : > { %vm492_vm2 = vcmp.eq.f32.partialorder %v490_v37, 0.0 }
 0x122   : > { %v494_v44 = vsel %vm492_vm2, -inf, %v490_v37 }
 0x123   : > { %v497_v46 = vsel %vm496_vm3, %v494_v44, -inf }
 0x124   : > { %v485_v40 = vpop.xlane.xlu0 %484 }
 0x125   : > { %v489_v41 = vadd.f32 %v487_v22, %v485_v40 }
 0x127   : > { %v491_v43 = vmul.f32 %v489_v41, %v397_v39 }
 0x129   : > { %vm493_vm4 = vcmp.eq.f32.partialorder %v491_v43, 0.0 }
 0x12a   : > { %v495_v45 = vsel %vm493_vm4, -inf, %v491_v43 }
 0x12b   : > { %v498_v47 = vsel %vm496_vm3, %v495_v45, -inf }
 0x12c   : > { %v499_v48 = vmax.f32 %v497_v46, %v498_v47 }
 0x12e   : > { %v500_v49 = vrot.slane %v499_v48, 4 }
 0x130   : > { %v501_v50 = vmax.f32 %v499_v48, %v500_v49 }
 0x132   : > { %v502_v51 = vrot.slane %v501_v50, 2 }
 0x134   : > { %v503_v52 = vmax.f32 %v501_v50, %v502_v51 }
 0x136   : > { %v504_v53 = vrot.slane %v503_v52, 1 }
 0x138   : > { %v505_v54 = vmax.f32 %v503_v52, %v504_v53 }
 0x13a   : > { %v507_v55 = vsub.f32 %v495_v45, %v505_v54  ;;  %v506_v56 = vsub.f32 %v494_v44, %v505_v54 }
 0x13c   : > { %v510_v57 = vmul.f32 1.442695, %v507_v55  ;;  %v508_v58 = vmul.f32 1.442695, %v506_v56 }
 0x13e   : > { %816 = vpow2.f32 %v510_v57 }
 0x13f   : > { %818 = vpow2.f32 %v508_v58 }
 0x144   : > { %v817_v59 = vpop.eup %816 }
 0x145   : > { %v819_v60 = vpop.eup %818  ;;  %v513_v61 = vsel %vm496_vm3, %v817_v59, 0.0 }
 0x146   : > { %v512_v62 = vsel %vm496_vm3, %v819_v60, 0.0 }
 0x147   : > { %v514_v63 = vadd.f32 %v513_v61, %v512_v62 }
 0x149   : > { %v515_v0 = vrot.slane %v514_v63, 4 }
 0x14b   : > { %v516_v1 = vadd.f32 %v515_v0, %v514_v63 }
 0x14d   : > { %v517_v2 = vrot.slane %v516_v1, 2 }
 0x14f   : > { %v518_v3 = vadd.f32 %v517_v2, %v516_v1 }
 0x151   : > { %v519_v4 = vrot.slane %v518_v3, 1 }
 0x153   : > { %v520_v5 = vadd.f32 %v519_v4, %v518_v3 }
 0x155   : > { %820 = vrcp.f32 %v520_v5 }
 0x15b   : > { %v821_v6 = vpop.eup %820 }
 0x15c   : > { %v522_v7 = vmul.f32 %v821_v6, %v819_v60  ;;  %v523_v8 = vmul.f32 %v821_v6, %v817_v59 }
 0x15e   : > { %578 = vperm.xlu1 %807, %v522_v7  }
 0x166   : > { %583 = vperm.xlu1 %807, %v523_v8  }
 0x1d0   : > { %v579_v11 = vpop.permute.xlu1 %578 }
 0x1d1   : > { %v586_v12 = vmul.f32 %v579_v11, %v571_v9 }
 0x1d3   : > { %v588_v16 = vadd.f32 %v586_v12, %v557_v10 }
 0x1d5   : > { %v594_v20 = vadd.f32 %v811_v15, %v588_v16 }
 0x1d8   : > { %v584_v14 = vpop.permute.xlu1 %583 }
 0x1d9   : > { %v587_v17 = vmul.f32 %v584_v14, %v573_v13 }
 0x1db   : > { %v589_v19 = vadd.f32 %v587_v17, %v559_v18 }
 0x1dd   : > { %v595_v21 = vadd.f32 %v811_v15, %v589_v19 }
 0x1df   : > { %v763_v22 = vpack.c.bf16 %v595_v21, %v594_v20 }
 0x1e1   : > { %764 = vst [vmem:[%s379_s26] sm:$0xff] %v763_v22  }
 0x1e2   : > { %849 = shalt.err (!%p846_p3)
}
 0x1e3   : > { %s887_s29 = smov 64   ;;  %s888_s14 = smov 4  }
 0x1e4   : > { %765 = dma.vmem_to_hbm [thread:$0]  (%p985_p5), %s614_s27, 128, %s616_s28, %s601_s7, %s887_s29, %s887_s29, %s888_s14  }
 0x1e5 PF: > { %p771_p4 = scmp.ge.s32.totalorder %s884_s18, 2  ;;  %s630_s26 = sand.u32 1, %s872_s15  }
 0x1e6   : > { %s631_s13 = scalar_lea.sflag [#allocation4], %s630_s26 }
 0x1e7   : > { %p768_p7 = pnand %p771_p4, %p989_p6 }
 0x1e9   : > { %p769_p8 = pneg %p768_p7 }
 0x1eb   : > { %867 = dma.done.wait (%p769_p8), %s631_s13, 128  }
 0x1ec   : > { %869 = vsyncadd (%p769_p8), %s631_s13, 4294967168  ;;  %p21_p9 = scmp.ge.s32.totalorder %s972_s20, 4   ;;  %s1108_s15 = smov %s876_s16 }
 0x1ed   : > { %s1109_s16 = smov %s880_s17  ;;  %s1110_s17 = smov %s983_s23 }
 0x1ee   : > { %s1111_s18 = smov %s972_s20  ;;  %23 = sbr.rel (!%p21_p9) target bundleno = 5 (0x5), region = 101 }
 0x1f3   :  { %637 = vsyncpa [#allocation4], 1 }
 0x1f4   :  { %639 = vsyncpa [#allocation4 + $0x1], 1 }

</bundles_post_ra>
